<compile_context>
chip_gen: v5e
topology: v5e:2x2
jax: 0.10.0
libtpu: 0.0.40
codegen_flags: <defaults>
</compile_context>

<pallas_src>
import jax
import jax.numpy as jnp
from jax import lax
from jax.experimental import pallas as pl
from jax.experimental.pallas import tpu as pltpu


def _round_up(x, m):
    return (x + m - 1) // m * m


def _sublane_multiple(dtype):
    # f32 -> 8, bf16 -> 16, int8/fp8 -> 32 (packed sublanes).
    return max(8, 32 // jnp.dtype(dtype).itemsize)


# Tile maxima.  With TM=512, TN=256, TK=512 (f32) the double-buffered GEMM
# working set is ~4.5 MiB — comfortably inside the default scoped-VMEM limit on
# v5e/v6e/v7x, so no vmem_limit_bytes bump is needed.  128-aligned TN/TK match
# both the v5e 4x128^2 and v6e/v7x 2x256^2 MXU granules; the large TM keeps the
# per-grid-step overhead (~0.35 us) amortized and the output stores lane-dense.
_TM_MAX, _TN_MAX, _TK_MAX = 512, 256, 512


# ---------------------------------------------------------------------------
# Pass 1: per-channel sums for the BatchNorm batch statistics.
# Grid = (C_tiles, M_tiles); M (rows = batch*seq) is the reduction axis and is
# last, so the (1, TK) outputs stay VMEM-resident as accumulators.
# Padded rows of x are zero and the wrapper divides by the true M, so the
# statistics are exact.
# ---------------------------------------------------------------------------
def _col_stats_kernel(x_ref, sum_ref, sumsq_ref):
    @pl.when(pl.program_id(1) == 0)
    def _():
        sum_ref[...] = jnp.zeros_like(sum_ref)
        sumsq_ref[...] = jnp.zeros_like(sumsq_ref)

    x = x_ref[...].astype(jnp.float32)
    sum_ref[...] += jnp.sum(x, axis=0, keepdims=True)
    sumsq_ref[...] += jnp.sum(x * x, axis=0, keepdims=True)


def _column_stats(x2d_pad, tm, tk):
    m_pad, c_pad = x2d_pad.shape
    return pl.pallas_call(
        _col_stats_kernel,
        out_shape=(jax.ShapeDtypeStruct((1, c_pad), jnp.float32),
                   jax.ShapeDtypeStruct((1, c_pad), jnp.float32)),
        grid=(c_pad // tk, m_pad // tm),
        in_specs=[pl.BlockSpec((tm, tk), lambda c, i: (i, c))],
        out_specs=(pl.BlockSpec((1, tk), lambda c, i: (0, c)),
                   pl.BlockSpec((1, tk), lambda c, i: (0, c))),
        compiler_params=pltpu.CompilerParams(
            dimension_semantics=("parallel", "arbitrary")),
    )(x2d_pad)


# ---------------------------------------------------------------------------
# Pass 2: tiled GEMM + bias.  x:(TM,TK), w:(TN,TK) (torch (out,in) layout,
# contracted over K directly), bias:(1,TN), out:(TM,TN), f32 accumulator.
# ---------------------------------------------------------------------------
def _matmul_bias_kernel(x_ref, w_ref, b_ref, o_ref, acc_ref):
    k = pl.program_id(2)

    @pl.when(k == 0)
    def _():
        acc_ref[...] = jnp.zeros_like(acc_ref)

    acc_ref[...] += lax.dot_general(
        x_ref[...], w_ref[...],
        dimension_numbers=(((1,), (1,)), ((), ())),
        preferred_element_type=jnp.float32)

    @pl.when(k == pl.num_programs(2) - 1)
    def _():
        o_ref[...] = (acc_ref[...] + b_ref[...]).astype(o_ref.dtype)


def bn_linear(x, gamma, beta, weight, bias):
    """x: (batch, seq, C) -> (batch, seq, OUT); weight: (OUT, C) torch layout."""
    n, s, c = x.shape
    out_f = weight.shape[0]
    m = n * s

    # Tile sizes / padded extents (lane-dense, 128-aligned OUT and K).
    sub = _sublane_multiple(x.dtype)
    tm = min(_TM_MAX, _round_up(m, sub))
    tk = min(_TK_MAX, _round_up(c, 128))
    tn = min(_TN_MAX, _round_up(out_f, 128))
    m_pad = _round_up(m, tm)
    c_pad = _round_up(c, tk)
    out_pad = _round_up(out_f, tn)

    x2d = x.reshape(m, c)
    if (m_pad, c_pad) != (m, c):
        x2d = jnp.pad(x2d, ((0, m_pad - m), (0, c_pad - c)))

    # ---- pass 1: batch statistics per channel ----
    sums, sumsqs = _column_stats(x2d, tm, tk)
    inv_m = jnp.float32(1.0 / m)
    mean = sums * inv_m                                      # (1, c_pad)
    var = jnp.maximum(sumsqs * inv_m - mean * mean, 0.0)     # biased variance
    inv_std = lax.rsqrt(var + jnp.float32(1e-5))

    # ---- fold BN into the GEMM operands (cheap, O(C*OUT), outside kernel) ----
    gamma_p = jnp.pad(gamma.astype(jnp.float32), (0, c_pad - c))
    beta_p = jnp.pad(beta.astype(jnp.float32), (0, c_pad - c))
    scale = gamma_p[None, :] * inv_std                       # (1, c_pad)
    shift = beta_p[None, :] - mean * scale                   # (1, c_pad)

    w_pad = jnp.pad(weight.astype(jnp.float32),
                    ((0, out_pad - out_f), (0, c_pad - c)))  # (out_pad, c_pad)
    b_pad = jnp.pad(bias.astype(jnp.float32), (0, out_pad - out_f))
    w_eff = (w_pad * scale).astype(x.dtype)                  # MXU fed in x dtype
    b_eff = (b_pad + jnp.sum(w_pad * shift, axis=1))[None, :]  # (1, out_pad) f32

    itemsize = jnp.dtype(x.dtype).itemsize
    cost = pl.CostEstimate(
        flops=2 * m_pad * c_pad * out_pad,
        transcendentals=0,
        bytes_accessed=(m_pad * c_pad + out_pad * c_pad + m_pad * out_pad)
        * itemsize + out_pad * 4)

    out2d = pl.pallas_call(
        _matmul_bias_kernel,
        out_shape=jax.ShapeDtypeStruct((m_pad, out_pad), x.dtype),
        grid=(m_pad // tm, out_pad // tn, c_pad // tk),
        in_specs=[
            pl.BlockSpec((tm, tk), lambda i, j, k: (i, k)),
            pl.BlockSpec((tn, tk), lambda i, j, k: (j, k)),
            pl.BlockSpec((1, tn), lambda i, j, k: (0, j)),
        ],
        out_specs=pl.BlockSpec((tm, tn), lambda i, j, k: (i, j)),
        scratch_shapes=[pltpu.VMEM((tm, tn), jnp.float32)],
        compiler_params=pltpu.CompilerParams(
            dimension_semantics=("parallel", "parallel", "arbitrary")),
        cost_estimate=cost,
    )(x2d, w_eff, b_eff)

    if (m_pad, out_pad) != (m, out_f):
        out2d = out2d[:m, :out_f]
    return out2d.reshape(n, s, out_f)


def _xavier_uniform(key, out_features, in_features, dtype=jnp.float32):
    limit = (6.0 / (in_features + out_features)) ** 0.5
    return jax.random.uniform(key, (out_features, in_features),
                              minval=-limit, maxval=limit, dtype=dtype)


if __name__ == "__main__":
    # Small shapes consistent with the module: x (batch, seq, in_features).
    batch, seq, in_features, out_features = 2, 8, 32, 32

    key = jax.random.PRNGKey(0)
    kx, kw = jax.random.split(key)

    x = jax.random.normal(kx, (batch, seq, in_features), dtype=jnp.float32)
    gamma = jnp.ones((in_features,), dtype=jnp.float32)   # BatchNorm1d weight
    beta = jnp.zeros((in_features,), dtype=jnp.float32)   # BatchNorm1d bias
    weight = _xavier_uniform(kw, out_features, in_features)
    bias = jnp.zeros((out_features,), dtype=jnp.float32)

    fn = jax.jit(bn_linear)
    out = fn(x, gamma, beta, weight, bias)
    jax.block_until_ready(out)

    # Reference (training-mode BatchNorm semantics) in plain JAX.
    x2d = x.reshape(-1, in_features)
    mean = x2d.mean(0, keepdims=True)
    var = ((x2d - mean) ** 2).mean(0, keepdims=True)
    xn = (x2d - mean) / jnp.sqrt(var + 1e-5) * gamma + beta
    ref = (xn @ weight.T + bias).reshape(batch, seq, out_features)

    assert out.shape == ref.shape
    assert jnp.allclose(out, ref, atol=2e-4, rtol=2e-4), "mismatch vs reference"

    # TODO(synk): BatchNorm1d running_mean/running_var buffer updates (a
    # training-time side effect that does not affect this forward output) are
    # not replicated.
    print("KERNEL_OK")
</pallas_src>

<mosaic_0001>
module attributes {stable_mosaic.version = 11 : i64} {
  func.func @_col_stats_kernel(%arg0: i32, %arg1: i32, %arg2: memref<16x128xf32, #tpu.memory_space<vmem>>, %arg3: memref<1x128xf32, #tpu.memory_space<vmem>>, %arg4: memref<1x128xf32, #tpu.memory_space<vmem>>) attributes {dimension_semantics = [#tpu.dimension_semantics<parallel>, #tpu.dimension_semantics<arbitrary>], iteration_bounds = array<i64: 1, 1>, scalar_prefetch = 0 : i64, scratch_operands = 0 : i64, tpu.core_type = #tpu.core_type<tc>, window_params = [{transform_indices = @transform_0, window_bounds = array<i64: 16, 128>}, {transform_indices = @transform_1, window_bounds = array<i64: 1, 128>}, {transform_indices = @transform_2, window_bounds = array<i64: 1, 128>}]} {
    %c0_i32 = arith.constant 0 : i32
    %0 = arith.cmpi eq, %arg1, %c0_i32 : i32
    %1 = arith.extui %0 : i1 to i32
    %c0_i32_0 = arith.constant 0 : i32
    %2 = arith.cmpi ne, %1, %c0_i32_0 : i32
    scf.if %2 {
      %cst_11 = arith.constant 0.000000e+00 : f32
      %15 = vector.broadcast %cst_11 : f32 to vector<1x128xf32>
      %c0_12 = arith.constant 0 : index
      %c0_13 = arith.constant 0 : index
      %16 = vector.load %arg3[%c0_12, %c0_13] : memref<1x128xf32, #tpu.memory_space<vmem>>, vector<1x128xf32>
      tpu.vector_store %arg3[%c0_12, %c0_13], %15 {strides = array<i32>} : memref<1x128xf32, #tpu.memory_space<vmem>>, vector<1x128xf32>,
      %cst_14 = arith.constant 0.000000e+00 : f32
      %17 = vector.broadcast %cst_14 : f32 to vector<1x128xf32>
      %c0_15 = arith.constant 0 : index
      %c0_16 = arith.constant 0 : index
      %18 = vector.load %arg4[%c0_15, %c0_16] : memref<1x128xf32, #tpu.memory_space<vmem>>, vector<1x128xf32>
      tpu.vector_store %arg4[%c0_15, %c0_16], %17 {strides = array<i32>} : memref<1x128xf32, #tpu.memory_space<vmem>>, vector<1x128xf32>,
    } else {
    }
    %c0 = arith.constant 0 : index
    %c0_1 = arith.constant 0 : index
    %3 = vector.load %arg2[%c0, %c0_1] : memref<16x128xf32, #tpu.memory_space<vmem>>, vector<16x128xf32>
    %c0_2 = arith.constant 0 : index
    %c0_3 = arith.constant 0 : index
    %4 = vector.load %arg3[%c0_2, %c0_3] : memref<1x128xf32, #tpu.memory_space<vmem>>, vector<1x128xf32>
    %cst = arith.constant dense<0.000000e+00> : vector<128xf32>
    %5 = vector.multi_reduction <add>, %3, %cst [0] : vector<16x128xf32> to vector<128xf32>
    %6 = vector.shape_cast %5 : vector<128xf32> to vector<1x128xf32>
    %7 = arith.addf %4, %6 : vector<1x128xf32>
    %c0_4 = arith.constant 0 : index
    %c0_5 = arith.constant 0 : index
    %8 = vector.load %arg3[%c0_4, %c0_5] : memref<1x128xf32, #tpu.memory_space<vmem>>, vector<1x128xf32>
    tpu.vector_store %arg3[%c0_4, %c0_5], %7 {strides = array<i32>} : memref<1x128xf32, #tpu.memory_space<vmem>>, vector<1x128xf32>,
    %c0_6 = arith.constant 0 : index
    %c0_7 = arith.constant 0 : index
    %9 = vector.load %arg4[%c0_6, %c0_7] : memref<1x128xf32, #tpu.memory_space<vmem>>, vector<1x128xf32>
    %10 = arith.mulf %3, %3 : vector<16x128xf32>
    %cst_8 = arith.constant dense<0.000000e+00> : vector<128xf32>
    %11 = vector.multi_reduction <add>, %10, %cst_8 [0] : vector<16x128xf32> to vector<128xf32>
    %12 = vector.shape_cast %11 : vector<128xf32> to vector<1x128xf32>
    %13 = arith.addf %9, %12 : vector<1x128xf32>
    %c0_9 = arith.constant 0 : index
    %c0_10 = arith.constant 0 : index
    %14 = vector.load %arg4[%c0_9, %c0_10] : memref<1x128xf32, #tpu.memory_space<vmem>>, vector<1x128xf32>
    tpu.vector_store %arg4[%c0_9, %c0_10], %13 {strides = array<i32>} : memref<1x128xf32, #tpu.memory_space<vmem>>, vector<1x128xf32>,
    return
  }
  func.func @transform_0(%arg0: i32, %arg1: i32) -> (i32, i32) {
    %c0_i32 = arith.constant 0 : i32
    return %arg1, %arg0 : i32, i32
  }
  func.func @transform_1(%arg0: i32, %arg1: i32) -> (i32, i32) {
    %c0_i32 = arith.constant 0 : i32
    %c0_i32_0 = arith.constant 0 : i32
    return %c0_i32, %arg0 : i32, i32
  }
  func.func @transform_2(%arg0: i32, %arg1: i32) -> (i32, i32) {
    %c0_i32 = arith.constant 0 : i32
    %c0_i32_0 = arith.constant 0 : i32
    return %c0_i32, %arg0 : i32, i32
  }
}

module attributes {stable_mosaic.version = 11 : i64} {
  func.func @_matmul_bias_kernel(%arg0: i32, %arg1: i32, %arg2: i32, %arg3: memref<16x128xf32, #tpu.memory_space<vmem>>, %arg4: memref<128x128xf32, #tpu.memory_space<vmem>>, %arg5: memref<1x128xf32, #tpu.memory_space<vmem>>, %arg6: memref<16x128xf32, #tpu.memory_space<vmem>>, %arg7: memref<16x128xf32, #tpu.memory_space<vmem>>) attributes {dimension_semantics = [#tpu.dimension_semantics<parallel>, #tpu.dimension_semantics<parallel>, #tpu.dimension_semantics<arbitrary>], iteration_bounds = array<i64: 1, 1, 1>, scalar_prefetch = 0 : i64, scratch_operands = 1 : i64, tpu.core_type = #tpu.core_type<tc>, window_params = [{transform_indices = @transform_0, window_bounds = array<i64: 16, 128>}, {transform_indices = @transform_1, window_bounds = array<i64: 128, 128>}, {transform_indices = @transform_2, window_bounds = array<i64: 1, 128>}, {transform_indices = @transform_3, window_bounds = array<i64: 16, 128>}]} {
    %c0_i32 = arith.constant 0 : i32
    %0 = arith.cmpi eq, %arg2, %c0_i32 : i32
    %1 = arith.extui %0 : i1 to i32
    %c0_i32_0 = arith.constant 0 : i32
    %2 = arith.cmpi ne, %1, %c0_i32_0 : i32
    scf.if %2 {
      %cst_10 = arith.constant 0.000000e+00 : f32
      %12 = vector.broadcast %cst_10 : f32 to vector<16x128xf32>
      %c0_11 = arith.constant 0 : index
      %c0_12 = arith.constant 0 : index
      %13 = vector.load %arg7[%c0_11, %c0_12] : memref<16x128xf32, #tpu.memory_space<vmem>>, vector<16x128xf32>
      tpu.vector_store %arg7[%c0_11, %c0_12], %12 {strides = array<i32>} : memref<16x128xf32, #tpu.memory_space<vmem>>, vector<16x128xf32>,
    } else {
    }
    %c0 = arith.constant 0 : index
    %c0_1 = arith.constant 0 : index
    %3 = vector.load %arg7[%c0, %c0_1] : memref<16x128xf32, #tpu.memory_space<vmem>>, vector<16x128xf32>
    %c0_2 = arith.constant 0 : index
    %c0_3 = arith.constant 0 : index
    %4 = vector.load %arg3[%c0_2, %c0_3] : memref<16x128xf32, #tpu.memory_space<vmem>>, vector<16x128xf32>
    %c0_4 = arith.constant 0 : index
    %c0_5 = arith.constant 0 : index
    %5 = vector.load %arg4[%c0_4, %c0_5] : memref<128x128xf32, #tpu.memory_space<vmem>>, vector<128x128xf32>
    %cst = arith.constant dense<0.000000e+00> : vector<16x128xf32>
    %6 = tpu.matmul %4, %5, %cst {dimension_numbers = #tpu.dot_dimension_numbers<[1], [1], [0], [0], [0, 0, 1, 0], [], []>} : vector<16x128xf32>, vector<128x128xf32>, vector<16x128xf32> -> vector<16x128xf32>
    %7 = arith.addf %3, %6 : vector<16x128xf32>
    %c0_6 = arith.constant 0 : index
    %c0_7 = arith.constant 0 : index
    %8 = vector.load %arg7[%c0_6, %c0_7] : memref<16x128xf32, #tpu.memory_space<vmem>>, vector<16x128xf32>
    tpu.vector_store %arg7[%c0_6, %c0_7], %7 {strides = array<i32>} : memref<16x128xf32, #tpu.memory_space<vmem>>, vector<16x128xf32>,
    %c0_i32_8 = arith.constant 0 : i32
    %9 = arith.cmpi eq, %arg2, %c0_i32_8 : i32
    %10 = arith.extui %9 : i1 to i32
    %c0_i32_9 = arith.constant 0 : i32
    %11 = arith.cmpi ne, %10, %c0_i32_9 : i32
    scf.if %11 {
      %c0_10 = arith.constant 0 : index
      %c0_11 = arith.constant 0 : index
      %12 = vector.load %arg7[%c0_10, %c0_11] : memref<16x128xf32, #tpu.memory_space<vmem>>, vector<16x128xf32>
      %c0_12 = arith.constant 0 : index
      %c0_13 = arith.constant 0 : index
      %13 = vector.load %arg5[%c0_12, %c0_13] : memref<1x128xf32, #tpu.memory_space<vmem>>, vector<1x128xf32>
      %14 = vector.broadcast %13 : vector<1x128xf32> to vector<16x128xf32>
      %15 = arith.addf %12, %14 : vector<16x128xf32>
      %c0_14 = arith.constant 0 : index
      %c0_15 = arith.constant 0 : index
      %16 = vector.load %arg6[%c0_14, %c0_15] : memref<16x128xf32, #tpu.memory_space<vmem>>, vector<16x128xf32>
      tpu.vector_store %arg6[%c0_14, %c0_15], %15 {strides = array<i32>} : memref<16x128xf32, #tpu.memory_space<vmem>>, vector<16x128xf32>,
    } else {
    }
    return
  }
  func.func @transform_0(%arg0: i32, %arg1: i32, %arg2: i32) -> (i32, i32) {
    %c0_i32 = arith.constant 0 : i32
    return %arg0, %arg2 : i32, i32
  }
  func.func @transform_1(%arg0: i32, %arg1: i32, %arg2: i32) -> (i32, i32) {
    %c0_i32 = arith.constant 0 : i32
    return %arg1, %arg2 : i32, i32
  }
  func.func @transform_2(%arg0: i32, %arg1: i32, %arg2: i32) -> (i32, i32) {
    %c0_i32 = arith.constant 0 : i32
    %c0_i32_0 = arith.constant 0 : i32
    return %c0_i32, %arg1 : i32, i32
  }
  func.func @transform_3(%arg0: i32, %arg1: i32, %arg2: i32) -> (i32, i32) {
    %c0_i32 = arith.constant 0 : i32
    return %arg0, %arg1 : i32, i32
  }
}

</mosaic_0001>

<bundles_post_ra>
// kernel: bn_linear.2
= control target key start
LH: loop header
LB: loop body
LE: loop exit
PB: predicated region body
PF: predicated region fallthrough
CT: control target
= control target key end

     0   :  { %v49_v0 = vmov 0.0   ;;  %s89_s1 = inlined_call_operand.vmem [shape: f32[1,128], index: 1, kind: output, shape index: {0}]   ;;  %s90_s2 = inlined_call_operand.vmem [shape: f32[1,128], index: 2, kind: output, shape index: {1}]   ;;  %s91_s0 = inlined_call_operand.vmem [shape: f32[16,128], index: 0, kind: input, shape index: {}]  }
   0x1   :  { %14 = vst [vmem:[%s89_s1] sm:$0x1] %v49_v0  ;;  %v16_v1 = vld [vmem:[%s91_s0] sm:$0xff]  ;;  %v17_v2 = vld [vmem:[%s91_s0 + $0x8] sm:$0xff] }
   0x2   :  { %15 = vst [vmem:[%s90_s2] sm:$0x1] %v49_v0  ;;  %v19_v3 = vadd.f32 %v17_v2, %v16_v1  ;;  %v29_v4 = vmul.f32 %v16_v1, %v16_v1  ;;  %v30_v5 = vmul.f32 %v17_v2, %v17_v2 }
   0x4   :  { %v20_v6 = vrot.slane %v19_v3, 4  ;;  %v31_v7 = vadd.f32 %v30_v5, %v29_v4 }
   0x6   :  { %v21_v8 = vadd.f32 %v20_v6, %v19_v3  ;;  %v32_v9 = vrot.slane %v31_v7, 4 }
   0x8   :  { %v22_v10 = vrot.slane %v21_v8, 2  ;;  %v33_v11 = vadd.f32 %v32_v9, %v31_v7  ;;  %v18_v16 = vld [vmem:[%s89_s1] sm:$0x1] }
   0x9   :  { %v28_v19 = vld [vmem:[%s90_s2] sm:$0x1] }
   0xa   :  { %v23_v12 = vadd.f32 %v22_v10, %v21_v8  ;;  %v34_v13 = vrot.slane %v33_v11, 2 }
   0xc   :  { %v24_v14 = vrot.slane %v23_v12, 1  ;;  %v35_v15 = vadd.f32 %v34_v13, %v33_v11 }
   0xe   :  { %v25_v17 = vadd.f32 %v24_v14, %v23_v12  ;;  %v36_v18 = vrot.slane %v35_v15, 1 }
  0x10   :  { %v26_v20 = vadd.f32 %v25_v17, %v18_v16  ;;  %v37_v21 = vadd.f32 %v36_v18, %v35_v15 }
  0x12   :  { %27 = vst [vmem:[%s89_s1] sm:$0x1] %v26_v20  ;;  %v38_v22 = vadd.f32 %v37_v21, %v28_v19 }
  0x14   :  { %39 = vst [vmem:[%s90_s2] sm:$0x1] %v38_v22 }

// kernel: bn_linear.3
= control target key start
LH: loop header
LB: loop body
LE: loop exit
PB: predicated region body
PF: predicated region fallthrough
CT: control target
= control target key end

     0   :  { %s184_s1 = inlined_call_operand.vmem [shape: f32[128,128], index: 1, kind: input, shape index: {}]   ;;  %s185_s2 = inlined_call_operand.vmem [shape: f32[1,128], index: 2, kind: input, shape index: {}]   ;;  %s186_s0 = inlined_call_operand.vmem [shape: f32[16,128], index: 0, kind: input, shape index: {}]   ;;  %s187_s3 = inlined_call_operand.vmem [shape: f32[16,128], index: 3, kind: output, shape index: {}]  }
   0x1   :  { %v39_v0 = vld [vmem:[%s184_s1 + $0x78] sm:$0xff]  ;;  %v38_v1 = vld [vmem:[%s184_s1 + $0x70] sm:$0xff]  ;;  %v37_v2 = vld [vmem:[%s184_s1 + $0x68] sm:$0xff] }
   0x2   :  { %40 = vmatpush.xpose.msra.mxu0 %v39_v0  ;;  %84 = vmatpush.xpose.msra.mxu1 %v39_v0  ;;  %v36_v3 = vld [vmem:[%s184_s1 + $0x60] sm:$0xff]  ;;  %v35_v4 = vld [vmem:[%s184_s1 + $0x58] sm:$0xff]  ;;  %v34_v5 = vld [vmem:[%s184_s1 + $0x50] sm:$0xff] }
   0x3   :  { %v33_v6 = vld [vmem:[%s184_s1 + $0x48] sm:$0xff]  ;;  %v32_v7 = vld [vmem:[%s184_s1 + $0x40] sm:$0xff]  ;;  %v31_v8 = vld [vmem:[%s184_s1 + $0x38] sm:$0xff] }
   0x4   :  { %v30_v9 = vld [vmem:[%s184_s1 + $0x30] sm:$0xff]  ;;  %v29_v10 = vld [vmem:[%s184_s1 + $0x28] sm:$0xff]  ;;  %v28_v11 = vld [vmem:[%s184_s1 + $0x20] sm:$0xff] }
   0x5   :  { %v27_v12 = vld [vmem:[%s184_s1 + $0x18] sm:$0xff]  ;;  %v26_v13 = vld [vmem:[%s184_s1 + $0x10] sm:$0xff]  ;;  %v25_v14 = vld [vmem:[%s184_s1 + $0x8] sm:$0xff] }
   0x6   :  { %41 = vmatpush.xpose.msra.mxu0 %v38_v1  ;;  %85 = vmatpush.xpose.msra.mxu1 %v38_v1  ;;  %v24_v15 = vld [vmem:[%s184_s1] sm:$0xff]  ;;  %v23_v17 = vld [vmem:[%s186_s0 + $0x8] sm:$0xff] }
   0x7   :  { %v22_v16 = vld [vmem:[%s186_s0] sm:$0xff] }
   0x8   :  { %v100_v18 = vld [vmem:[%s185_s2] ss:$0 sm:$0xff] }
   0xa   :  { %42 = vmatpush.xpose.msra.mxu0 %v37_v2  ;;  %86 = vmatpush.xpose.msra.mxu1 %v37_v2 }
   0xe   :  { %43 = vmatpush.xpose.msra.mxu0 %v36_v3  ;;  %87 = vmatpush.xpose.msra.mxu1 %v36_v3 }
  0x12   :  { %44 = vmatpush.xpose.msra.mxu0 %v35_v4  ;;  %88 = vmatpush.xpose.msra.mxu1 %v35_v4 }
  0x16   :  { %45 = vmatpush.xpose.msra.mxu0 %v34_v5  ;;  %89 = vmatpush.xpose.msra.mxu1 %v34_v5 }
  0x1a   :  { %46 = vmatpush.xpose.msra.mxu0 %v33_v6  ;;  %90 = vmatpush.xpose.msra.mxu1 %v33_v6 }
  0x1e   :  { %47 = vmatpush.xpose.msra.mxu0 %v32_v7  ;;  %91 = vmatpush.xpose.msra.mxu1 %v32_v7 }
  0x22   :  { %48 = vmatpush.xpose.msra.mxu0 %v31_v8  ;;  %92 = vmatpush.xpose.msra.mxu1 %v31_v8 }
  0x26   :  { %49 = vmatpush.xpose.msra.mxu0 %v30_v9  ;;  %93 = vmatpush.xpose.msra.mxu1 %v30_v9 }
  0x2a   :  { %50 = vmatpush.xpose.msra.mxu0 %v29_v10  ;;  %94 = vmatpush.xpose.msra.mxu1 %v29_v10 }
  0x2e   :  { %51 = vmatpush.xpose.msra.mxu0 %v28_v11  ;;  %95 = vmatpush.xpose.msra.mxu1 %v28_v11 }
  0x32   :  { %52 = vmatpush.xpose.msra.mxu0 %v27_v12  ;;  %96 = vmatpush.xpose.msra.mxu1 %v27_v12 }
  0x36   :  { %53 = vmatpush.xpose.msra.mxu0 %v26_v13  ;;  %97 = vmatpush.xpose.msra.mxu1 %v26_v13 }
  0x3a   :  { %54 = vmatpush.xpose.msra.mxu0 %v25_v14  ;;  %98 = vmatpush.xpose.msra.mxu1 %v25_v14 }
  0x3e   :  { %55 = vmatpush.xpose.msra.mxu0 %v24_v15  ;;  %99 = vmatpush.xpose.msra.mxu1 %v24_v15 }
  0x41   :  { %56 = vmatmul.f32.vlgmr.msra.gmra.mxu0 %v22_v16  ;;  %59 = vmatmul.f32.vlgmr.msra.gmra.mxu1 %v23_v17 }
  0xbe   :  { %v57_v19 = vpop.f32.mrf.mxu0  ;;  %v60_v20 = vpop.f32.mrf.mxu1 }
  0xbf   :  { %v76_v21 = vadd.f32 %v100_v18, %v57_v19  ;;  %v77_v22 = vadd.f32 %v100_v18, %v60_v20 }
  0xc1   :  { %78 = vst [vmem:[%s187_s3] sm:$0xff] %v76_v21 }
  0xc2   :  { %79 = vst [vmem:[%s187_s3 + $0x8] sm:$0xff] %v77_v22 }

</bundles_post_ra>
